<compile_context>
chip_gen: v6e
topology: v6e:2x2x1
jax: 0.10.0
libtpu: 0.0.40
codegen_flags: <defaults>
</compile_context>

<pallas_src>
import functools

import jax
import jax.numpy as jnp
from jax import lax
from jax.experimental import pallas as pl
from jax.experimental.pallas import tpu as pltpu


def _dict_ce_kernel(tgt_ref, *refs, weights, num_pixels, tile_pixels,
                    tiles_per_split, need_mask, ignore_index):
    """Fused weighted cross-entropy over all dict branches for one (batch, split, tile).

    tgt_ref     : (1, T) int32 labels for this pixel tile
    refs        : n_branch logits refs (C, T),
                  then part_ref (2, 128) output block  [row0: weighted CE sum, row1: valid count],
                  then ce_acc (1, T) and cnt_acc (1, T) VMEM scratch accumulators.
    """
    n_branch = len(weights)
    logit_refs = refs[:n_branch]
    part_ref = refs[n_branch]
    ce_acc_ref = refs[n_branch + 1]
    cnt_acc_ref = refs[n_branch + 2]

    si = pl.program_id(1)
    ji = pl.program_id(2)

    @pl.when(ji == 0)
    def _():
        ce_acc_ref[...] = jnp.zeros_like(ce_acc_ref)
        cnt_acc_ref[...] = jnp.zeros_like(cnt_acc_ref)
        part_ref[...] = jnp.zeros_like(part_ref)

    tgt = tgt_ref[...]                                             # (1, T) int32
    num_classes = logit_refs[0].shape[0]

    # Hoisted loop-invariants shared by all dict branches (JAX does not CSE iota).
    cls = lax.broadcasted_iota(jnp.int32, (num_classes, tile_pixels), 0)
    onehot = cls == tgt                                            # (C, T) one-hot target mask

    # Per-pixel weighted CE across all branches: sum_k w_k * (lse_k - picked_k).
    ce_total = None
    for w, lref in zip(weights, logit_refs):
        lf = lref[...].astype(jnp.float32)                         # (C, T)
        m = jnp.max(lf, axis=0, keepdims=True)                     # (1, T)
        lse = m + jnp.log(jnp.sum(jnp.exp(lf - m), axis=0, keepdims=True))
        picked = jnp.sum(jnp.where(onehot, lf, 0.0), axis=0, keepdims=True)
        term = w * (lse - picked)
        ce_total = term if ce_total is None else ce_total + term   # (1, T)

    # Validity mask: in-bounds pixels (skip statically when grid covers hw exactly)
    # and non-ignored targets.  Applied BEFORE accumulation so garbage from padded
    # HBM reads can never reach the accumulators.
    tvalid = (tgt != ignore_index) if ignore_index is not None else None
    if need_mask:
        cols = ((si * tiles_per_split + ji) * tile_pixels
                + lax.broadcasted_iota(jnp.int32, (1, tile_pixels), 1))
        bounds = cols < num_pixels
        valid = bounds if tvalid is None else jnp.logical_and(bounds, tvalid)
    else:
        valid = tvalid

    if valid is not None:
        ce_total = jnp.where(valid, ce_total, 0.0)
        cnt = valid.astype(jnp.float32)
    else:
        cnt = jnp.ones((1, tile_pixels), jnp.float32)

    # Lane-wise accumulation into resident VMEM scratch (pure VALU adds).
    ce_acc_ref[...] += ce_total
    cnt_acc_ref[...] += cnt

    # Fold the (1, T) accumulators down to the (2, 128) output block once, on the
    # last reduction step of this (batch, split) output block.
    @pl.when(ji == pl.num_programs(2) - 1)
    def _():
        ce_acc = ce_acc_ref[...]
        cnt_acc = cnt_acc_ref[...]
        ce_row = jnp.zeros((1, 128), jnp.float32)
        cnt_row = jnp.zeros((1, 128), jnp.float32)
        for k in range(tile_pixels // 128):
            sl = slice(k * 128, (k + 1) * 128)
            ce_row = ce_row + ce_acc[:, sl]
            cnt_row = cnt_row + cnt_acc[:, sl]
        part_ref[0:1, :] = ce_row
        part_ref[1:2, :] = cnt_row


def dict_cross_entropy_loss(input_dict, target, weights, *, tile_pixels=16384,
                            ignore_index=-100, vmem_budget_bytes=12 * 1024 * 1024):
    """DictLossWrapper(CrossEntropyLoss, weights) forward:
       sum_k weights[k] * CE_mean(input_dict[k], target) with ignore_index support."""
    keys = list(weights.keys())
    w_vals = tuple(float(weights[k]) for k in keys)
    logits_list = [input_dict[k] for k in keys]
    n_branch = len(keys)

    b, c, h, w = logits_list[0].shape
    hw = h * w

    # Lane-dense pixel tile: multiple of 128, capped so the double-buffered input
    # tiles + scratch stay within a budget that fits every generation's default
    # scoped VMEM (v5e 16 MiB / v6e 32 MiB / v7x 32 MiB).
    hw_pad = pl.cdiv(hw, 128) * 128
    t = max(128, min((int(tile_pixels) // 128) * 128, hw_pad))
    c_pad = pl.cdiv(c, 8) * 8
    bpe = jnp.dtype(logits_list[0].dtype).itemsize

    def _footprint(tt):
        # double-buffered logits + labels, plus the two (1, tt) f32 scratch accumulators
        return 2 * (n_branch * c_pad * tt * bpe + tt * 4) + 2 * tt * 4

    while t > 128 and _footprint(t) > vmem_budget_bytes:
        t = max(128, ((t // 2) // 128) * 128)

    total_tiles = pl.cdiv(hw, t)
    # v7x megacore: for B == 1 split the pixel-tile range across a second parallel
    # axis so both TensorCores get work.  Perf-neutral on single-TC v5e/v6e.
    n_splits = 2 if (b == 1 and total_tiles >= 2) else 1
    tiles_per_split = pl.cdiv(total_tiles, n_splits)
    need_mask = (n_splits * tiles_per_split * t) != hw

    logits_flat = [x.reshape(b, c, hw) for x in logits_list]       # free reshape
    tgt_flat = target.reshape(b, 1, hw).astype(jnp.int32)

    last_tile = total_tiles - 1
    if n_splits * tiles_per_split == total_tiles:
        def tile_idx(si, ji):
            return si * tiles_per_split + ji
    else:
        # The split axis overshoots the tile range by at most one tile; clamp the
        # block index (the overshoot tile is fully masked out inside the kernel).
        def tile_idx(si, ji):
            return jnp.minimum(si * tiles_per_split + ji, last_tile)

    grid = (b, n_splits, tiles_per_split)

    kernel = functools.partial(
        _dict_ce_kernel, weights=w_vals, num_pixels=hw, tile_pixels=t,
        tiles_per_split=tiles_per_split, need_mask=need_mask,
        ignore_index=ignore_index)

    in_specs = [pl.BlockSpec((None, 1, t), lambda bi, si, ji: (bi, 0, tile_idx(si, ji)))]
    in_specs += [pl.BlockSpec((None, c, t), lambda bi, si, ji: (bi, 0, tile_idx(si, ji)))
                 for _ in logits_flat]
    out_specs = pl.BlockSpec((None, 2, 128),
                             lambda bi, si, ji: (bi * n_splits + si, 0, 0))

    partials = pl.pallas_call(
        kernel,
        out_shape=jax.ShapeDtypeStruct((b * n_splits, 2, 128), jnp.float32),
        grid=grid,
        in_specs=in_specs,
        out_specs=out_specs,
        scratch_shapes=[pltpu.VMEM((1, t), jnp.float32),
                        pltpu.VMEM((1, t), jnp.float32)],
        compiler_params=pltpu.CompilerParams(
            dimension_semantics=("parallel", "parallel", "arbitrary")),
    )(tgt_flat, *logits_flat)

    ce_sum = jnp.sum(partials[:, 0, :])          # lane-wise partial sums
    valid_count = jnp.sum(partials[:, 1, :])     # number of non-ignored pixels
    return ce_sum / valid_count                  # mean over valid pixels


def dict_cross_entropy_reference(input_dict, target, weights, ignore_index=-100):
    """Pure-JAX reference mirroring the torch forward math (CE mean w/ ignore_index)."""
    valid = target != ignore_index
    denom = jnp.sum(valid.astype(jnp.float32))
    loss = None
    for k, wgt in weights.items():
        logits = input_dict[k].astype(jnp.float32)
        c = logits.shape[1]
        logp = jax.nn.log_softmax(logits, axis=1)
        tgt_safe = jnp.where(valid, target, 0)
        onehot = jax.nn.one_hot(tgt_safe, c, axis=1, dtype=jnp.float32)
        ce = -jnp.sum(logp * onehot, axis=1)                       # (B, H, W)
        ce = jnp.where(valid, ce, 0.0)
        sub = jnp.float32(wgt) * jnp.sum(ce) / denom
        loss = sub if loss is None else loss + sub
    return loss


if __name__ == "__main__":
    weights = {"out": 1.0, "aux": 0.5}

    def run_case(batch, num_classes, height, width, tile_pixels, key,
                 ignore_index=-100, ignore_fraction=0.0):
        k_out, k_aux, k_tgt, k_ign = jax.random.split(key, 4)
        out_logits = jax.random.normal(
            k_out, (batch, num_classes, height, width), jnp.float32)
        aux_logits = jax.random.normal(
            k_aux, (batch, num_classes, height, width), jnp.float32)
        targets = jax.random.randint(
            k_tgt, (batch, height, width), 0, num_classes)
        if ignore_fraction > 0.0:
            drop = jax.random.uniform(k_ign, targets.shape) < ignore_fraction
            targets = jnp.where(drop, ignore_index, targets)
        input_dict = {"out": out_logits, "aux": aux_logits}

        loss = dict_cross_entropy_loss(input_dict, targets, weights,
                                       tile_pixels=tile_pixels,
                                       ignore_index=ignore_index)
        jax.block_until_ready(loss)
        ref = dict_cross_entropy_reference(input_dict, targets, weights,
                                           ignore_index=ignore_index)
        assert loss.shape == (), loss.shape
        assert jnp.allclose(loss, ref, rtol=1e-4, atol=1e-4), (loss, ref)

    key = jax.random.PRNGKey(0)
    k1, k2, k3, k4 = jax.random.split(key, 4)

    # Multi-tile reduction over the pixel axis (2 tiles / batch), no masking.
    run_case(2, 21, 16, 16, 128, k1)
    # Ragged last tile exercises the bounds mask.
    run_case(2, 21, 16, 20, 128, k2)
    # B=1: pixel tiles split across the second parallel axis (v7x megacore);
    # odd tile count also exercises the clamped overshoot tile.
    run_case(1, 21, 16, 24, 128, k3)
    # ignore_index=255 (void pixels) exercises the valid-pixel-count denominator.
    run_case(2, 21, 16, 16, 128, k4, ignore_index=255, ignore_fraction=0.25)

    print("KERNEL_OK")
</pallas_src>

<mosaic_0001>
module attributes {stable_mosaic.version = 11 : i64} {
  func.func @_dict_ce_kernel(%arg0: i32, %arg1: i32, %arg2: i32, %arg3: memref<1x1x128xi32, #tpu.memory_space<vmem>>, %arg4: memref<1x21x128xf32, #tpu.memory_space<vmem>>, %arg5: memref<1x21x128xf32, #tpu.memory_space<vmem>>, %arg6: memref<1x2x128xf32, #tpu.memory_space<vmem>>, %arg7: memref<1x128xf32, #tpu.memory_space<vmem>>, %arg8: memref<1x128xf32, #tpu.memory_space<vmem>>) attributes {dimension_semantics = [#tpu.dimension_semantics<parallel>, #tpu.dimension_semantics<parallel>, #tpu.dimension_semantics<arbitrary>], iteration_bounds = array<i64: 2, 1, 2>, scalar_prefetch = 0 : i64, scratch_operands = 2 : i64, tpu.core_type = #tpu.core_type<tc>, window_params = [{transform_indices = @transform_0, window_bounds = array<i64: 1, 1, 128>}, {transform_indices = @transform_1, window_bounds = array<i64: 1, 21, 128>}, {transform_indices = @transform_2, window_bounds = array<i64: 1, 21, 128>}, {transform_indices = @transform_3, window_bounds = array<i64: 1, 2, 128>}]} {
    %c0_i32 = arith.constant 0 : i32
    %0 = arith.cmpi eq, %arg2, %c0_i32 : i32
    %1 = arith.extui %0 : i1 to i32
    %c0_i32_0 = arith.constant 0 : i32
    %2 = arith.cmpi ne, %1, %c0_i32_0 : i32
    scf.if %2 {
      %cst_28 = arith.constant 0.000000e+00 : f32
      %60 = vector.broadcast %cst_28 : f32 to vector<1x128xf32>
      %c0_29 = arith.constant 0 : index
      %c0_30 = arith.constant 0 : index
      %61 = vector.load %arg7[%c0_29, %c0_30] : memref<1x128xf32, #tpu.memory_space<vmem>>, vector<1x128xf32>
      tpu.vector_store %arg7[%c0_29, %c0_30], %60 {strides = array<i32>} : memref<1x128xf32, #tpu.memory_space<vmem>>, vector<1x128xf32>,
      %cst_31 = arith.constant 0.000000e+00 : f32
      %62 = vector.broadcast %cst_31 : f32 to vector<1x128xf32>
      %c0_32 = arith.constant 0 : index
      %c0_33 = arith.constant 0 : index
      %63 = vector.load %arg8[%c0_32, %c0_33] : memref<1x128xf32, #tpu.memory_space<vmem>>, vector<1x128xf32>
      tpu.vector_store %arg8[%c0_32, %c0_33], %62 {strides = array<i32>} : memref<1x128xf32, #tpu.memory_space<vmem>>, vector<1x128xf32>,
      %cst_34 = arith.constant 0.000000e+00 : f32
      %64 = vector.broadcast %cst_34 : f32 to vector<2x128xf32>
      %c0_35 = arith.constant 0 : index
      %c0_36 = arith.constant 0 : index
      %c0_37 = arith.constant 0 : index
      %65 = vector.load %arg6[%c0_35, %c0_36, %c0_37] : memref<1x2x128xf32, #tpu.memory_space<vmem>>, vector<1x2x128xf32>
      %66 = vector.shape_cast %65 : vector<1x2x128xf32> to vector<2x128xf32>
      %67 = vector.shape_cast %64 : vector<2x128xf32> to vector<1x2x128xf32>
      tpu.vector_store %arg6[%c0_35, %c0_36, %c0_37], %67 {strides = array<i32>} : memref<1x2x128xf32, #tpu.memory_space<vmem>>, vector<1x2x128xf32>,
    } else {
    }
    %c0 = arith.constant 0 : index
    %c0_1 = arith.constant 0 : index
    %c0_2 = arith.constant 0 : index
    %3 = vector.load %arg3[%c0, %c0_1, %c0_2] : memref<1x1x128xi32, #tpu.memory_space<vmem>>, vector<1x1x128xi32>
    %4 = vector.shape_cast %3 : vector<1x1x128xi32> to vector<1x128xi32>
    %5 = tpu.iota {dimensions = array<i32: 0>} : vector<21x128xi32>
    %6 = vector.broadcast %4 : vector<1x128xi32> to vector<21x128xi32>
    %7 = arith.cmpi eq, %5, %6 : vector<21x128xi32>
    %c0_3 = arith.constant 0 : index
    %c0_4 = arith.constant 0 : index
    %c0_5 = arith.constant 0 : index
    %8 = vector.load %arg4[%c0_3, %c0_4, %c0_5] : memref<1x21x128xf32, #tpu.memory_space<vmem>>, vector<1x21x128xf32>
    %9 = vector.shape_cast %8 : vector<1x21x128xf32> to vector<21x128xf32>
    %cst = arith.constant dense<0xFF800000> : vector<128xf32>
    %10 = vector.multi_reduction <maximumf>, %9, %cst [0] : vector<21x128xf32> to vector<128xf32>
    %11 = vector.shape_cast %10 : vector<128xf32> to vector<1x128xf32>
    %12 = vector.broadcast %11 : vector<1x128xf32> to vector<21x128xf32>
    %13 = arith.subf %9, %12 : vector<21x128xf32>
    %14 = math.exp %13 : vector<21x128xf32>
    %cst_6 = arith.constant dense<0.000000e+00> : vector<128xf32>
    %15 = vector.multi_reduction <add>, %14, %cst_6 [0] : vector<21x128xf32> to vector<128xf32>
    %16 = vector.shape_cast %15 : vector<128xf32> to vector<1x128xf32>
    %17 = math.log %16 : vector<1x128xf32>
    %18 = arith.addf %11, %17 : vector<1x128xf32>
    %cst_7 = arith.constant 0.000000e+00 : f32
    %19 = vector.broadcast %cst_7 : f32 to vector<21x128xf32>
    %20 = arith.select %7, %9, %19 : vector<21x128xi1>, vector<21x128xf32>
    %cst_8 = arith.constant dense<0.000000e+00> : vector<128xf32>
    %21 = vector.multi_reduction <add>, %20, %cst_8 [0] : vector<21x128xf32> to vector<128xf32>
    %22 = vector.shape_cast %21 : vector<128xf32> to vector<1x128xf32>
    %23 = arith.subf %18, %22 : vector<1x128xf32>
    %cst_9 = arith.constant 1.000000e+00 : f32
    %24 = vector.broadcast %cst_9 : f32 to vector<1x128xf32>
    %25 = arith.mulf %24, %23 : vector<1x128xf32>
    %c0_10 = arith.constant 0 : index
    %c0_11 = arith.constant 0 : index
    %c0_12 = arith.constant 0 : index
    %26 = vector.load %arg5[%c0_10, %c0_11, %c0_12] : memref<1x21x128xf32, #tpu.memory_space<vmem>>, vector<1x21x128xf32>
    %27 = vector.shape_cast %26 : vector<1x21x128xf32> to vector<21x128xf32>
    %cst_13 = arith.constant dense<0xFF800000> : vector<128xf32>
    %28 = vector.multi_reduction <maximumf>, %27, %cst_13 [0] : vector<21x128xf32> to vector<128xf32>
    %29 = vector.shape_cast %28 : vector<128xf32> to vector<1x128xf32>
    %30 = vector.broadcast %29 : vector<1x128xf32> to vector<21x128xf32>
    %31 = arith.subf %27, %30 : vector<21x128xf32>
    %32 = math.exp %31 : vector<21x128xf32>
    %cst_14 = arith.constant dense<0.000000e+00> : vector<128xf32>
    %33 = vector.multi_reduction <add>, %32, %cst_14 [0] : vector<21x128xf32> to vector<128xf32>
    %34 = vector.shape_cast %33 : vector<128xf32> to vector<1x128xf32>
    %35 = math.log %34 : vector<1x128xf32>
    %36 = arith.addf %29, %35 : vector<1x128xf32>
    %cst_15 = arith.constant 0.000000e+00 : f32
    %37 = vector.broadcast %cst_15 : f32 to vector<21x128xf32>
    %38 = arith.select %7, %27, %37 : vector<21x128xi1>, vector<21x128xf32>
    %cst_16 = arith.constant dense<0.000000e+00> : vector<128xf32>
    %39 = vector.multi_reduction <add>, %38, %cst_16 [0] : vector<21x128xf32> to vector<128xf32>
    %40 = vector.shape_cast %39 : vector<128xf32> to vector<1x128xf32>
    %41 = arith.subf %36, %40 : vector<1x128xf32>
    %cst_17 = arith.constant 5.000000e-01 : f32
    %42 = vector.broadcast %cst_17 : f32 to vector<1x128xf32>
    %43 = arith.mulf %42, %41 : vector<1x128xf32>
    %44 = arith.addf %25, %43 : vector<1x128xf32>
    %c-100_i32 = arith.constant -100 : i32
    %45 = vector.broadcast %c-100_i32 : i32 to vector<1x128xi32>
    %46 = arith.cmpi ne, %4, %45 : vector<1x128xi32>
    %cst_18 = arith.constant 0.000000e+00 : f32
    %47 = vector.broadcast %cst_18 : f32 to vector<1x128xf32>
    %48 = arith.select %46, %44, %47 : vector<1x128xi1>, vector<1x128xf32>
    %49 = arith.extui %46 : vector<1x128xi1> to vector<1x128xi32>
    %50 = arith.sitofp %49 : vector<1x128xi32> to vector<1x128xf32>
    %c0_19 = arith.constant 0 : index
    %c0_20 = arith.constant 0 : index
    %51 = vector.load %arg7[%c0_19, %c0_20] : memref<1x128xf32, #tpu.memory_space<vmem>>, vector<1x128xf32>
    %52 = arith.addf %51, %48 : vector<1x128xf32>
    %c0_21 = arith.constant 0 : index
    %c0_22 = arith.constant 0 : index
    %53 = vector.load %arg7[%c0_21, %c0_22] : memref<1x128xf32, #tpu.memory_space<vmem>>, vector<1x128xf32>
    tpu.vector_store %arg7[%c0_21, %c0_22], %52 {strides = array<i32>} : memref<1x128xf32, #tpu.memory_space<vmem>>, vector<1x128xf32>,
    %c0_23 = arith.constant 0 : index
    %c0_24 = arith.constant 0 : index
    %54 = vector.load %arg8[%c0_23, %c0_24] : memref<1x128xf32, #tpu.memory_space<vmem>>, vector<1x128xf32>
    %55 = arith.addf %54, %50 : vector<1x128xf32>
    %c0_25 = arith.constant 0 : index
    %c0_26 = arith.constant 0 : index
    %56 = vector.load %arg8[%c0_25, %c0_26] : memref<1x128xf32, #tpu.memory_space<vmem>>, vector<1x128xf32>
    tpu.vector_store %arg8[%c0_25, %c0_26], %55 {strides = array<i32>} : memref<1x128xf32, #tpu.memory_space<vmem>>, vector<1x128xf32>,
    %c1_i32 = arith.constant 1 : i32
    %57 = arith.cmpi eq, %arg2, %c1_i32 : i32
    %58 = arith.extui %57 : i1 to i32
    %c0_i32_27 = arith.constant 0 : i32
    %59 = arith.cmpi ne, %58, %c0_i32_27 : i32
    scf.if %59 {
      %c0_28 = arith.constant 0 : index
      %c0_29 = arith.constant 0 : index
      %60 = vector.load %arg7[%c0_28, %c0_29] : memref<1x128xf32, #tpu.memory_space<vmem>>, vector<1x128xf32>
      %c0_30 = arith.constant 0 : index
      %c0_31 = arith.constant 0 : index
      %61 = vector.load %arg8[%c0_30, %c0_31] : memref<1x128xf32, #tpu.memory_space<vmem>>, vector<1x128xf32>
      %cst_32 = arith.constant 0.000000e+00 : f32
      %62 = vector.broadcast %cst_32 : f32 to vector<1x128xf32>
      %cst_33 = arith.constant 0.000000e+00 : f32
      %63 = vector.broadcast %cst_33 : f32 to vector<1x128xf32>
      %64 = arith.addf %62, %60 : vector<1x128xf32>
      %65 = arith.addf %63, %61 : vector<1x128xf32>
      %c0_34 = arith.constant 0 : index
      %c0_35 = arith.constant 0 : index
      %c0_36 = arith.constant 0 : index
      %66 = vector.load %arg6[%c0_34, %c0_35, %c0_36] : memref<1x2x128xf32, #tpu.memory_space<vmem>>, vector<1x1x128xf32>
      %67 = vector.shape_cast %66 : vector<1x1x128xf32> to vector<1x128xf32>
      %68 = vector.shape_cast %64 : vector<1x128xf32> to vector<1x1x128xf32>
      tpu.vector_store %arg6[%c0_34, %c0_35, %c0_36], %68 {strides = array<i32>} : memref<1x2x128xf32, #tpu.memory_space<vmem>>, vector<1x1x128xf32>,
      %c0_37 = arith.constant 0 : index
      %c1 = arith.constant 1 : index
      %c0_38 = arith.constant 0 : index
      %69 = vector.load %arg6[%c0_37, %c1, %c0_38] : memref<1x2x128xf32, #tpu.memory_space<vmem>>, vector<1x1x128xf32>
      %70 = vector.shape_cast %69 : vector<1x1x128xf32> to vector<1x128xf32>
      %71 = vector.shape_cast %65 : vector<1x128xf32> to vector<1x1x128xf32>
      tpu.vector_store %arg6[%c0_37, %c1, %c0_38], %71 {strides = array<i32>} : memref<1x2x128xf32, #tpu.memory_space<vmem>>, vector<1x1x128xf32>,
    } else {
    }
    return
  }
  func.func @transform_0(%arg0: i32, %arg1: i32, %arg2: i32) -> (i32, i32, i32) {
    %c2_i32 = arith.constant 2 : i32
    %0 = arith.muli %arg1, %c2_i32 : i32
    %1 = arith.addi %0, %arg2 : i32
    %c0_i32 = arith.constant 0 : i32
    %c0_i32_0 = arith.constant 0 : i32
    return %arg0, %c0_i32, %1 : i32, i32, i32
  }
  func.func @transform_1(%arg0: i32, %arg1: i32, %arg2: i32) -> (i32, i32, i32) {
    %c2_i32 = arith.constant 2 : i32
    %0 = arith.muli %arg1, %c2_i32 : i32
    %1 = arith.addi %0, %arg2 : i32
    %c0_i32 = arith.constant 0 : i32
    %c0_i32_0 = arith.constant 0 : i32
    return %arg0, %c0_i32, %1 : i32, i32, i32
  }
  func.func @transform_2(%arg0: i32, %arg1: i32, %arg2: i32) -> (i32, i32, i32) {
    %c2_i32 = arith.constant 2 : i32
    %0 = arith.muli %arg1, %c2_i32 : i32
    %1 = arith.addi %0, %arg2 : i32
    %c0_i32 = arith.constant 0 : i32
    %c0_i32_0 = arith.constant 0 : i32
    return %arg0, %c0_i32, %1 : i32, i32, i32
  }
  func.func @transform_3(%arg0: i32, %arg1: i32, %arg2: i32) -> (i32, i32, i32) {
    %c1_i32 = arith.constant 1 : i32
    %0 = arith.muli %arg0, %c1_i32 : i32
    %1 = arith.addi %0, %arg1 : i32
    %c0_i32 = arith.constant 0 : i32
    %c0_i32_0 = arith.constant 0 : i32
    %c0_i32_1 = arith.constant 0 : i32
    return %1, %c0_i32, %c0_i32_0 : i32, i32, i32
  }
}

</mosaic_0001>

<bundles_post_ra>
// kernel: tpu_custom_call.1
= control target key start
LH: loop header
LB: loop body
LE: loop exit
PB: predicated region body
PF: predicated region fallthrough
CT: control target
= control target key end

     0   :  { %s1128_s0 = inlined_call_operand.vmem [shape: s32[2,1,256], index: 0, kind: input, shape index: {}]   ;;  %s1129_s1 = inlined_call_operand.vmem [shape: f32[2,21,256], index: 1, kind: input, shape index: {}]   ;;  %s1130_s2 = inlined_call_operand.vmem [shape: f32[2,21,256], index: 2, kind: input, shape index: {}]   ;;  %s1131_s3 = inlined_call_operand.hbm [shape: f32[2,2,128], index: 3, kind: output, shape index: {}]  }
   0x1   :  { %1133 = sst [smem:[#allocation10_spill]] %s1129_s1 }
   0x2   :  { %1134 = sst [smem:[#allocation11_spill]] %s1130_s2 }
   0x3   :  { %8 = vsyncpa [#allocation7], 0 }
   0x4   :  { %10 = vsyncpa [#allocation7 + $0x1], 0  ;;  %s892_s12 = smov 0   ;;  %s894_s13 = smov 0  }
   0x5   :  { %s896_s14 = smov 0   ;;  %s898_s15 = smov 0  }
   0x6   :  { %s900_s16 = smov 0   ;;  %s902_s17 = smov 0  }
   0x7   :  { %s904_s18 = smov 0   ;;  %s906_s19 = smov 0  }
   0x8   :  { %s908_s20 = smov 0   ;;  %s910_s21 = smov 0  }
   0x9 LB: > { %s633_s22 = sadd.s32 4294967295, %s867_s21   ;;  %s634_s23 = sadd.s32 4294967294, %s867_s21   ;;  %s867_s21 = sphi %s910_s21, %s16_s21   ;;  %s863_s20 = sphi %s908_s20, %s1150_s20   ;;  %s859_s19 = sphi %s906_s19, %s1149_s19   ;;  %s855_s18 = sphi %s904_s18, %s1148_s18   ;;  %s851_s17 = sphi %s902_s17, %s1147_s17   ;;  %s847_s16 = sphi %s900_s16, %s1146_s16   ;;  %s843_s15 = sphi %s898_s15, %s1145_s15   ;;  %s839_s14 = sphi %s896_s14, %s1144_s14   ;;  %s835_s13 = sphi %s894_s13, %s1143_s13   ;;  %s831_s12 = sphi %s892_s12, %s1142_s12  }
   0xa   : > { %s28_s24 = sadd.s32 1, %s859_s19  ;;  %s35_s25 = sadd.s32 1, %s863_s20 }
   0xb   : > { %p29_p0 = scmp.ge.s32.totalorder %s28_s24, 2  ;;  %s80_s26 = sadd.s32 1, %s847_s16 }
   0xc   : > { %p87_p1 = scmp.ne.s32.totalorder %s847_s16, %s843_s15  ;;  %p88_p2 = scmp.eq.s32.totalorder %s867_s21, 0 }
   0xd   : > { %s1152_s24 = smov (%p29_p0, %s28_s24), 0  ;;  %s1154_s25 = smov (!%p29_p0, %s35_s25), %s863_s20 }
   0xe   : > { %s76_s27 = ssub.s32 %s859_s19, %s1152_s24  ;;  %p955_p3 = por %p88_p2, %p87_p1 }
   0xf   : > { %p37_p4 = scmp.ge.s32.totalorder %s1154_s25, 2  ;;  %s140_s29 = sadd.s32 1, %s839_s14 }
  0x10   : > { %p150_p5 = scmp.ne.s32.totalorder %s839_s14, %s835_s13  ;;  %p151_p6 = scmp.eq.s32.totalorder %s633_s22, 3 }
  0x11   : > { %s1156_s25 = smov (%p37_p4, %s1154_s25), 0  ;;  %p156_p8 = scmp.ne.s32.totalorder %s835_s13, %s831_s12 }
  0x12   : > { %1136 = sst [smem:[#allocation9_spill]] %s1156_s25  ;;  %p964_p7 = por %p151_p6, %p150_p5 }
  0x13   : > { %s75_s4 = ssub.s32 %s863_s20, %s1156_s25  ;;  %p157_p9 = scmp.eq.s32.totalorder %s634_s23, 3 }
  0x14   : > { %s77_s5 = sor.u32 %s76_s27, %s75_s4  ;;  %p138_p10 = scmp.eq.s32.totalorder %s75_s4, 0 }
  0x15   : > { %p78_p11 = scmp.eq.s32.totalorder %s77_s5, 0  ;;  %p972_p12 = por %p157_p9, %p156_p8 }
  0x16   : > { %s977_s7 = scalar_select %p138_p10, %s839_s14, %s140_s29  }
  0x17   : > { %s980_s8 = scalar_select %p78_p11, %s847_s16, %s80_s26  }
  0x18   : > { %p636_p13 = scmp.ge.s32.totalorder %s867_s21, 4 }
  0x1a   : > { %173 = sbr.rel (%p636_p13) target bundleno = 53 (0x35), region = 16 }
  0x1f   : > { %190 = sbr.rel (!%p955_p3) target bundleno = 42 (0x2a), region = 24  ;;  %s192_s9 = sand.u32 (%p955_p3), 1, %s847_s16  }
  0x20   : > { %s650_s10 = smul.u32 (%p955_p3), 6, %s863_s20  ;;  %s1139_s1 = sld [smem:[#allocation10_spill]] (%p955_p3) }
  0x21   : > { %s649_s11 = smul.u32 (%p955_p3), 24, %s192_s9 }
  0x22   : > { %s198_s22 = sadd.s32 (%p955_p3), %s859_s19, %s650_s10 }
  0x23   : > { %s637_s23 = sshll.u32 (%p955_p3), %s198_s22, 3  ;;  %s194_s26 = scalar_lea.vmem (%p955_p3), [#allocation4], %s649_s11 }
  0x26   : > { %s200_s29 = scalar_lea.vmem %s1139_s1, %s637_s23 }
  0x27   : > { %v233_v0 = vld [vmem:[%s200_s29] sm:$0xff]  ;;  %v235_v1 = vld [vmem:[%s200_s29 + $0x10] sm:$0xff] }
  0x28   : > { %v237_v2 = vld [vmem:[%s200_s29 + $0x20] sm:$0xff]  ;;  %234 = vst [vmem:[%s194_s26] sm:$0xff] %v233_v0  ;;  %236 = vst [vmem:[%s194_s26 + $0x8] sm:$0xff] %v235_v1 }
  0x29   : > { %238 = vst [vmem:[%s194_s26 + $0x10] sm:$0xff] %v237_v2 }
  0x2a PF: > { %244 = sbr.rel (!%p955_p3) target bundleno = 53 (0x35), region = 62  ;;  %s246_s5 = sand.u32 (%p955_p3), 1, %s847_s16  }
  0x2b   : > { %s652_s9 = smul.u32 (%p955_p3), 6, %s863_s20  ;;  %s1140_s2 = sld [smem:[#allocation11_spill]] (%p955_p3) }
  0x2c   : > { %s651_s10 = smul.u32 (%p955_p3), 24, %s246_s5 }
  0x2d   : > { %s252_s22 = sadd.s32 (%p955_p3), %s859_s19, %s652_s9 }
  0x2e   : > { %s638_s27 = sshll.u32 (%p955_p3), %s252_s22, 3  ;;  %s248_s11 = scalar_lea.vmem (%p955_p3), [#allocation5], %s651_s10 }
  0x31   : > { %s254_s29 = scalar_lea.vmem %s1140_s2, %s638_s27 }
  0x32   : > { %v287_v3 = vld [vmem:[%s254_s29] sm:$0xff]  ;;  %v289_v4 = vld [vmem:[%s254_s29 + $0x10] sm:$0xff] }
  0x33   : > { %v291_v5 = vld [vmem:[%s254_s29 + $0x20] sm:$0xff]  ;;  %288 = vst [vmem:[%s248_s11] sm:$0xff] %v287_v3  ;;  %290 = vst [vmem:[%s248_s11 + $0x8] sm:$0xff] %v289_v4 }
  0x34   : > { %292 = vst [vmem:[%s248_s11 + $0x10] sm:$0xff] %v291_v5 }
  0x35 PF: > { %p639_p0 = scmp.ge.s32.totalorder %s867_s21, 1  ;;  %p297_p1 = scmp.lt.s32.totalorder %s867_s21, 5 }
  0x37   : > { %p298_p2 = pnand %p639_p0, %p297_p1 }
  0x38   : > { %s304_s28 = sand.u32 (!%p298_p2), 1, %s843_s15   ;;  %s344_s26 = sand.u32 (!%p298_p2), 1, %s835_s13  }
  0x39   : > { %301 = sbr.rel (%p298_p2) target bundleno = 187 (0xbb), region = 100  ;;  %s640_s9 = sshll.u32 (!%p298_p2), %s344_s26, 1 }
  0x3a   : > { %s653_s5 = smul.u32 (!%p298_p2), 24, %s304_s28  ;;  %p349_p3 = scmp.lt.s32.totalorder (!%p298_p2), %s855_s18, 1 }
  0x3b   : > { %p351_p4 = scmp.lt.s32.totalorder (!%p298_p2), %s851_s17, 1  ;;  %s1012_s25 = scalar_lea.vmem (!%p298_p2), [#allocation6], %s640_s9 }
  0x3c   : > { %s306_s1 = scalar_lea.vmem (!%p298_p2), [#allocation4], %s653_s5  ;;  %s313_s2 = scalar_lea.vmem (!%p298_p2), [#allocation5], %s653_s5 }
  0x3d   : > { %p642_p5 = scmp.ne.s32.totalorder (!%p298_p2), %s851_s17, 0 }
  0x3e   : > { %s350_s10 = scalar_select %p349_p3, %s855_s18, 1 }
  0x3f   : > { %s352_s27 = scalar_select %p351_p4, %s851_s17, 1 }
  0x40   : > { %s641_s22 = sshll.u32 %s350_s10, 1  ;;  %366 = sbr.rel (%p642_p5) target bundleno = 72 (0x48), region = 112 }
  0x41   : > { %s354_s23 = sadd.s32 %s641_s22, %s352_s27 }
  0x42   : > { %s355_s11 = scalar_lea.vmem %s1128_s0, %s354_s23 }
  0x45   : > { %v869_v6 = vmov 0.0  }
  0x46   : > { %367 = vst [vmem:[#allocation2] sm:$0x1] %v869_v6  ;;  %368 = vst [vmem:[#allocation3] sm:$0x1] %v869_v6 }
  0x47   : > { %369 = vst [vmem:[%s1012_s25] sm:$0x3] %v869_v6 }
  0x48 PF: > { %v1016_v7 = vld [vmem:[%s355_s11] sm:$0x1]  ;;  %v1020_v9 = vld [vmem:[%s306_s1 + $0x8] sm:$0xff]  ;;  %vm385_vm0 = vcmask 1044480   ;;  %v1022_v10 = vld [vmem:[%s306_s1 + $0x10] sm:$0x1f]  ;;  %v371_v42 = vlaneseq }
  0x49   : > { %v1018_v8 = vld [vmem:[%s306_s1] sm:$0xff]  ;;  %v1026_v12 = vld [vmem:[%s313_s2] sm:$0xff]  ;;  %v1028_v13 = vld [vmem:[%s313_s2 + $0x8] sm:$0xff]  ;;  %vm477_vm1 = vcmp.ne.s32.totalorder %v1016_v7, 4294967196  ;;  %v386_v14 = vsel %vm385_vm0, %v1022_v10, -inf  ;;  %v870_v19 = vmov 0.0  }
  0x4a   : > { %v387_v11 = vmax.f32 %v1018_v8, %v1020_v9  ;;  %v1033_v15 = vld [vmem:[%s313_s2 + $0x10] sm:$0x1f]  ;;  %v433_v16 = vmax.f32 %v1026_v12, %v1028_v13  ;;  %v643_v20 = vsel %vm477_vm1, 1.0, %v870_v19  ;;  %v372_v49 = vshrl.u32 %v371_v42, 7  ;;  %p644_p6 = scmp.ne.s32.totalorder %s851_s17, 1 }
  0x4b   : > { %v432_v18 = vsel %vm385_vm0, %v1033_v15, -inf }
  0x4c   : > { %v388_v17 = vmax.f32 %v387_v11, %v386_v14  ;;  %v434_v22 = vmax.f32 %v433_v16, %v432_v18  ;;  %v377_v50 = vsub.s32 0, %v372_v49  ;;  %v373_v51 = vadd.s32 8, %v372_v49 }
  0x4d   : > { %v484_v21 = vld [vmem:[#allocation3] sm:$0x1]  ;;  %v374_v53 = vadd.s32 16, %v372_v49 }
  0x4e   : > { %v389_v23 = vrot.slane %v388_v17, 4  ;;  %v485_v24 = vadd.f32 %v643_v20, %v484_v21  ;;  %v435_v25 = vrot.slane %v434_v22, 4  ;;  %v378_v52 = vrot.slane %v1016_v7, %v377_v50 }
  0x50   : > { %v390_v26 = vmax.f32 %v388_v17, %v389_v23  ;;  %486 = vst [vmem:[#allocation3] sm:$0x1] %v485_v24  ;;  %v436_v27 = vmax.f32 %v434_v22, %v435_v25  ;;  %vm379_vm2 = vcmp.eq.s32.totalorder %v372_v49, %v378_v52  ;;  %vm380_vm3 = vcmp.eq.s32.totalorder %v373_v51, %v378_v52  ;;  %v481_v51 = vld [vmem:[#allocation2] sm:$0x1] }
  0x51   : > { %vm381_vm4 = vcmp.eq.s32.totalorder %v374_v53, %v378_v52  ;;  %v416_v60 = vsel %vm379_vm2, %v1018_v8, 0.0  ;;  %v417_v63 = vsel %vm380_vm3, %v1020_v9, 0.0  ;;  %v462_v0 = vsel %vm379_vm2, %v1026_v12, 0.0 }
  0x52   : > { %v391_v28 = vrot.slane %v390_v26, 2  ;;  %v437_v29 = vrot.slane %v436_v27, 2  ;;  %v463_v1 = vsel %vm380_vm3, %v1028_v13, 0.0  ;;  %v418_v3 = vsel %vm381_vm4, %v1022_v10, 0.0 }
  0x53   : > { %v464_v5 = vsel %vm381_vm4, %v1033_v15, 0.0  ;;  %v419_v14 = vadd.f32 %v417_v63, %v416_v60  ;;  %v420_v18 = vsel %vm385_vm0, %v418_v3, 0.0 }
  0x54   : > { %v392_v30 = vmax.f32 %v390_v26, %v391_v28  ;;  %v438_v31 = vmax.f32 %v436_v27, %v437_v29 }
  0x56   : > { %v393_v32 = vrot.slane %v392_v30, 1  ;;  %v439_v33 = vrot.slane %v438_v31, 1 }
  0x58   : > { %v1041_v34 = vmax.f32 %v392_v30, %v393_v32  ;;  %v1043_v35 = vmax.f32 %v438_v31, %v439_v33 }
  0x5a   : > { %v395_v36 = vsub.f32 %v1018_v8, %v1041_v34  ;;  %v396_v37 = vsub.f32 %v1020_v9, %v1041_v34  ;;  %v397_v38 = vsub.f32 %v1022_v10, %v1041_v34  ;;  %v441_v39 = vsub.f32 %v1026_v12, %v1043_v35 }
  0x5b   : > { %v442_v40 = vsub.f32 %v1028_v13, %v1043_v35  ;;  %v443_v41 = vsub.f32 %v1033_v15, %v1043_v35  ;;  %v465_v8 = vadd.f32 %v463_v1, %v462_v0  ;;  %v466_v9 = vsel %vm385_vm0, %v464_v5, 0.0 }
  0x5c   : > { %v398_v43 = vmul.f32 1.442695, %v395_v36  ;;  %v400_v44 = vmul.f32 1.442695, %v396_v37  ;;  %v402_v45 = vmul.f32 1.442695, %v397_v38  ;;  %v421_v13 = vadd.f32 %v420_v18, %v419_v14 }
  0x5d   : > { %v444_v46 = vmul.f32 1.442695, %v441_v39  ;;  %v446_v47 = vmul.f32 1.442695, %v442_v40  ;;  %v448_v48 = vmul.f32 1.442695, %v443_v41  ;;  %v467_v21 = vadd.f32 %v466_v9, %v465_v8 }
  0x5e   : > { %743 = vpow2.f32 %v398_v43  ;;  %v422_v15 = vrot.slane %v421_v13, 4 }
  0x5f   : > { %745 = vpow2.f32 %v400_v44  ;;  %v468_v25 = vrot.slane %v467_v21, 4 }
  0x60   : > { %747 = vpow2.f32 %v402_v45  ;;  %v423_v28 = vadd.f32 %v422_v15, %v421_v13 }
  0x61   : > { %749 = vpow2.f32 %v444_v46  ;;  %v469_v30 = vadd.f32 %v468_v25, %v467_v21 }
  0x62   : > { %751 = vpow2.f32 %v446_v47  ;;  %v424_v31 = vrot.slane %v423_v28, 2 }
  0x63   : > { %753 = vpow2.f32 %v448_v48  ;;  %v470_v32 = vrot.slane %v469_v30, 2 }
  0x64   : > { %v425_v33 = vadd.f32 %v424_v31, %v423_v28 }
  0x65   : > { %v471_v36 = vadd.f32 %v470_v32, %v469_v30 }
  0x66   : > { %v426_v38 = vrot.slane %v425_v33, 1 }
  0x67   : > { %v472_v39 = vrot.slane %v471_v36, 1 }
  0x68   : > { %v427_v43 = vadd.f32 %v426_v38, %v425_v33 }
  0x69   : > { %v473_v45 = vadd.f32 %v472_v39, %v471_v36 }
  0x6b   : > { %v744_v54 = vpop.eup %743 }
  0x6c   : > { %v746_v55 = vpop.eup %745 }
  0x6d   : > { %v748_v56 = vpop.eup %747  ;;  %v404_v57 = vadd.f32 %v746_v55, %v744_v54 }
  0x6e   : > { %v750_v58 = vpop.eup %749  ;;  %v405_v59 = vsel %vm385_vm0, %v748_v56, 0.0 }
  0x6f   : > { %v752_v61 = vpop.eup %751  ;;  %v406_v62 = vadd.f32 %v405_v59, %v404_v57 }
  0x70   : > { %v754_v2 = vpop.eup %753  ;;  %v450_v4 = vadd.f32 %v752_v61, %v750_v58 }
  0x71   : > { %v407_v6 = vrot.slane %v406_v62, 4  ;;  %v451_v11 = vsel %vm385_vm0, %v754_v2, 0.0 }
  0x72   : > { %v452_v16 = vadd.f32 %v451_v11, %v450_v4 }
  0x73   : > { %v408_v17 = vadd.f32 %v407_v6, %v406_v62 }
  0x74   : > { %v453_v12 = vrot.slane %v452_v16, 4 }
  0x75   : > { %v409_v19 = vrot.slane %v408_v17, 2 }
  0x76   : > { %v454_v20 = vadd.f32 %v453_v12, %v452_v16 }
  0x77   : > { %v410_v10 = vadd.f32 %v409_v19, %v408_v17 }
  0x78   : > { %v455_v22 = vrot.slane %v454_v20, 2 }
  0x79   : > { %v411_v23 = vrot.slane %v410_v10, 1 }
  0x7a   : > { %v456_v24 = vadd.f32 %v455_v22, %v454_v20 }
  0x7b   : > { %v412_v26 = vadd.f32 %v411_v23, %v410_v10 }
  0x7c   : > { %v457_v27 = vrot.slane %v456_v24, 1 }
  0x7d   : > { %755 = vlog2.f32 %v412_v26 }
  0x7e   : > { %v458_v29 = vadd.f32 %v457_v27, %v456_v24 }
  0x80   : > { %757 = vlog2.f32 %v458_v29 }
  0x8a   : > { %v756_v37 = vpop.eup %755 }
  0x8b   : > { %v414_v40 = vmul.f32 0.6931472, %v756_v37 }
  0x8d   : > { %v758_v41 = vpop.eup %757  ;;  %v415_v42 = vadd.f32 %v414_v40, %v1041_v34 }
  0x8e   : > { %v460_v44 = vmul.f32 0.6931472, %v758_v41 }
  0x8f   : > { %v428_v47 = vsub.f32 %v415_v42, %v427_v43 }
  0x90   : > { %v461_v46 = vadd.f32 %v460_v44, %v1043_v35 }
  0x92   : > { %v474_v48 = vsub.f32 %v461_v46, %v473_v45 }
  0x94   : > { %v475_v49 = vmul.f32 0.5, %v474_v48 }
  0x96   : > { %v476_v50 = vadd.f32 %v475_v49, %v428_v47 }
  0x97   : > { %490 = sbr.rel (%p644_p6) target bundleno = 164 (0xa4), region = 116 }
  0x98   : > { %v478_v52 = vsel %vm477_vm1, %v476_v50, 0.0 }
  0x99   : > { %v482_v53 = vadd.f32 %v481_v51, %v478_v52 }
  0x9b   : > { %483 = vst [vmem:[#allocation2] sm:$0x1] %v482_v53 }
  0x9c   : > { %v492_v34 = vld [vmem:[#allocation3] sm:$0x1] }
  0x9d   : > { %496 = vst [vmem:[%s1012_s25 + $0x1] sm:$0x1] %v492_v34 }
  0xa2   : > { %v491_v54 = vld [vmem:[#allocation2] sm:$0x1] }
  0xa3   : > { %495 = vst [vmem:[%s1012_s25] sm:$0x1] %v491_v54 }
  0xa4 PF: > { %s646_s1 = sshll.u32 %s855_s18, 5  ;;  %s512_s5 = sshll.u32 %s1012_s25, 4  ;;  %s513_s5 = int_to_ptr.vmem [resolvable:$true] %s512_s5 }
  0xa5   : > { %s510_s28 = scalar_lea.hbm %s1131_s3, %s646_s1  ;;  %s498_s17 = scalar_lea.sflag [#allocation7], %s344_s26 }
  0xa6   : > { %s759_s9 = scalar_lea.vmem %s513_s5, 32  ;;  %s871_s10 = smov [#allocation6]  }
  0xa7   : > { %p760_p8 = scmp.ne.s32.totalorder %s513_s5, %s759_s9  ;;  %s763_s22 = sshll.u32 %s871_s10, 4  ;;  %s764_s22 = int_to_ptr.vmem [resolvable:$false] %s763_s22 }
  0xa8   : > { %s765_s27 = scalar_lea.vmem %s764_s22, 64  ;;  %p766_p11 = scmp.lt.s32.totalorder %s513_s5, %s764_s22 }
  0xa9   : > { %p761_p9 = pnand %p760_p8, %p964_p7  ;;  %p767_p13 = scmp.lt.s32.totalorder %s765_s27, %s759_s9 }
  0xab   : > { %p762_p10 = pneg %p761_p9  ;;  %p768_p0 = por %p767_p13, %p766_p11 }
  0xad   : > { %p769_p1 = pnand %p768_p0, %p762_p10 }
  0xaf   : > { %772 = shalt.err (!%p769_p1)
}
  0xb0   : > { %s773_s18 = scalar_lea.hbm %s510_s28, 32  ;;  %s777_s23 = scalar_lea.hbm %s1131_s3, 64 }
  0xb1   : > { %p774_p2 = scmp.ne.s32.totalorder %s510_s28, %s773_s18  ;;  %p778_p5 = scmp.lt.s32.totalorder %s510_s28, %s1131_s3 }
  0xb2   : > { %p779_p6 = scmp.lt.s32.totalorder %s777_s23, %s773_s18 }
  0xb3   : > { %p775_p3 = pnand %p774_p2, %p964_p7 }
  0xb4   : > { %p780_p8 = por %p779_p6, %p778_p5 }
  0xb5   : > { %p776_p4 = pneg %p775_p3 }
  0xb7   : > { %p781_p9 = pnand %p780_p8, %p776_p4 }
  0xb9   : > { %784 = shalt.err (!%p781_p9)
}
  0xba   : > { %654 = dma.vmem_to_hbm [thread:$0]  (%p964_p7), %s513_s5, 32, %s510_s28, %s498_s17  }
  0xbb PF: > { %p660_p10 = scmp.ge.s32.totalorder %s867_s21, 2  ;;  %s524_s11 = sand.u32 1, %s831_s12  }
  0xbc   : > { %s525_s1 = scalar_lea.sflag [#allocation7], %s524_s11 }
  0xbd   : > { %p657_p11 = pnand %p660_p10, %p972_p12 }
  0xbf   : > { %p658_p13 = pneg %p657_p11 }
  0xc1   : > { %826 = dma.done.wait (%p658_p13), %s525_s1, 32  }
  0xc2   : > { %828 = vsyncadd (%p658_p13), %s525_s1, 4294967264  ;;  %s16_s21 = sadd.s32 1, %s867_s21   ;;  %s1141_s30 = sld [smem:[#allocation9_spill]] }
  0xc3   : > { %p13_p0 = scmp.ge.s32.totalorder %s16_s21, 6   ;;  %s1142_s12 = smov %s835_s13 }
  0xc4   : > { %s1143_s13 = smov %s839_s14  ;;  %s1144_s14 = smov %s977_s7 }
  0xc5   : > { %s1145_s15 = smov %s847_s16  ;;  %s1146_s16 = smov %s980_s8 }
  0xc6   : > { %s1147_s17 = smov %s859_s19  ;;  %s1148_s18 = smov %s863_s20 }
  0xc7   : > { %s1149_s19 = smov %s1152_s24  ;;  %15 = sbr.rel (!%p13_p0) target bundleno = 9 (0x9), region = 167 }
  0xc8   : > { %s1150_s20 = smov %s1141_s30 }
  0xcc   :  { %530 = vsyncpa [#allocation7], 1 }
  0xcd   :  { %532 = vsyncpa [#allocation7 + $0x1], 1 }

</bundles_post_ra>
